<compile_context>
chip_gen: v6e
topology: v6e:2x2x1
jax: 0.10.0
libtpu: 0.0.40
codegen_flags: <defaults>
</compile_context>

<pallas_src>
import functools

import jax
import jax.numpy as jnp
from jax.experimental import pallas as pl
from jax.experimental.pallas import tpu as pltpu


def _round_up(x, m):
    return (x + m - 1) // m * m


def _tpu_vmem_capacity_bytes():
    try:
        return int(pltpu.get_tpu_info().vmem_capacity_bytes)
    except Exception:
        return 64 * 1024 * 1024          # conservative (v7x-sized) fallback


def _conv1d_relu_kernel(x_ref, w_ref, b_ref, o_ref, *, filtsz, tile_t,
                        compute_dtype):
    """One grid step = one (batch, time-tile) output block.

    x_ref: (1, T_in_p, C_p)   zero-padded per-batch input slab (VMEM resident)
    w_ref: (F, C_p, O_p)      per-tap weight matrices (compute dtype)
    b_ref: (1, O_p)           bias (f32)
    o_ref: (1, tile_t, O_p)   output tile
    """
    t = pl.program_id(1)
    t0 = pl.multiple_of(t * tile_t, tile_t)

    # Per-tap MXU matmuls accumulated in f32; slices read the resident slab
    # directly -- no im2col staging, no scratch buffer.
    acc = None
    for k in range(filtsz):
        lhs = x_ref[0, pl.ds(t0 + k, tile_t), :].astype(compute_dtype)
        part = jnp.dot(lhs, w_ref[k], preferred_element_type=jnp.float32)
        acc = part if acc is None else acc + part

    acc = acc + b_ref[...]                       # f32 bias broadcast (once/tile)
    o_ref[0] = jnp.maximum(acc, 0.0).astype(o_ref.dtype)


def conv_encoder_forward(x, weight_ocf, bias_o, *, filtsz,
                         compute_dtype=jnp.bfloat16, out_dtype=None,
                         tile_t=None, channels_last_in=False,
                         channels_last_out=False):
    """ConvEncoder forward (eval mode).

    x:          (B, C, T) PyTorch NCW layout (or (B, T, C) if channels_last_in).
    weight_ocf: (O, C, F); bias_o: (O,).
    Returns (B, O, T_out) (or (B, T_out, O) if channels_last_out).
    """
    if channels_last_in:
        B, T, C = x.shape
        x_btc = x
    else:
        B, C, T = x.shape
        x_btc = jnp.transpose(x, (0, 2, 1))
    O = weight_ocf.shape[0]
    assert weight_ocf.shape == (O, C, filtsz), weight_ocf.shape

    compute_dtype = jnp.dtype(compute_dtype)
    out_dtype = jnp.dtype(x.dtype) if out_dtype is None else jnp.dtype(out_dtype)

    pad = filtsz // 2
    t_out = T + 2 * pad - filtsz + 1

    # Lane-dense padding targets; sublane granularity matches the narrowest
    # dtype a tt-row block is stored in (16 rows for 2-byte dtypes).
    c_p = _round_up(C, 128)
    o_p = _round_up(O, 128)
    sub = 16 if min(compute_dtype.itemsize, out_dtype.itemsize) < 4 else 8

    cap = _tpu_vmem_capacity_bytes()
    if tile_t is None:
        tile_t = 256 if cap <= 64 * 1024 * 1024 else 512   # v7x vs v5e/v6e
    tt = _round_up(min(tile_t, _round_up(t_out, sub)), sub)
    t_out_p = _round_up(t_out, tt)
    nt = t_out_p // tt
    t_in_p = t_out_p + filtsz - 1              # halo rows for the last tile

    # Host-side glue (single fused pad pass): 'same' conv time padding + tile
    # remainder + lane-width channel padding.  x keeps the caller's dtype; the
    # cast to compute dtype happens per-slice inside the kernel.
    x_pad = jnp.pad(x_btc, ((0, 0), (pad, t_in_p - T - pad), (0, c_p - C)))

    # Weights: (O, C, F) -> (F, C_p, O_p) per-tap matrices in compute dtype.
    w_fco = jnp.pad(jnp.transpose(weight_ocf, (2, 1, 0)),
                    ((0, 0), (0, c_p - C), (0, o_p - O))).astype(compute_dtype)
    b_1o = jnp.pad(bias_o, (0, o_p - O)).reshape(1, o_p).astype(jnp.float32)

    kernel = functools.partial(_conv1d_relu_kernel, filtsz=filtsz, tile_t=tt,
                               compute_dtype=compute_dtype)

    x_isz = jnp.dtype(x_pad.dtype).itemsize
    cost = pl.CostEstimate(
        flops=2 * B * t_out_p * filtsz * c_p * o_p,
        transcendentals=0,
        bytes_accessed=(B * t_in_p * c_p * x_isz                     # x slab
                        + filtsz * c_p * o_p * compute_dtype.itemsize  # weights
                        + o_p * 4                                      # bias
                        + B * t_out_p * o_p * out_dtype.itemsize))     # output

    # Leave headroom below physical VMEM for compiler scratch / semaphores.
    vmem_limit = int(min(cap - 16 * 1024 * 1024, 100 * 1024 * 1024))

    out = pl.pallas_call(
        kernel,
        out_shape=jax.ShapeDtypeStruct((B, t_out_p, o_p), out_dtype),
        grid_spec=pltpu.PrefetchScalarGridSpec(
            num_scalar_prefetch=0,
            # Time tiles innermost: the per-batch x slab is DMA'd once/batch.
            grid=(B, nt),
            in_specs=[
                pl.BlockSpec((1, t_in_p, c_p), lambda b, t: (b, 0, 0)),
                pl.BlockSpec((filtsz, c_p, o_p), lambda b, t: (0, 0, 0)),
                pl.BlockSpec((1, o_p), lambda b, t: (0, 0)),
            ],
            out_specs=pl.BlockSpec((1, tt, o_p), lambda b, t: (b, t, 0)),
        ),
        compiler_params=pltpu.CompilerParams(
            # Batch parallel (v7x megacore shards batches); time arbitrary so
            # both TCs don't duplicate the resident slab DMA.
            dimension_semantics=("parallel", "arbitrary"),
            vmem_limit_bytes=vmem_limit,
        ),
        cost_estimate=cost,
    )(x_pad, w_fco, b_1o)

    out = out[:, :t_out, :O]                 # strip time/channel padding
    if channels_last_out:
        return out                           # (B, T_out, O): no extra HBM pass
    return jnp.transpose(out, (0, 2, 1))     # PyTorch (B, O, T_out)


def _reference_forward(x_bct, weight_ocf, bias_o, *, filtsz):
    """Pure-JAX reference matching nn.Conv1d + ReLU (eval-mode dropout)."""
    pad = filtsz // 2
    out = jax.lax.conv_general_dilated(
        x_bct, weight_ocf,
        window_strides=(1,),
        padding=[(pad, pad)],
        dimension_numbers=("NCH", "OIH", "NCH"),
        precision=jax.lax.Precision.HIGHEST,
    ) + bias_o[None, :, None]
    return jnp.maximum(out, 0.0)


if __name__ == "__main__":
    # Small shapes consistent with ConvEncoder(insz, outsz, filtsz, pdrop):
    B, insz, T = 2, 4, 16
    outsz, filtsz = 32, 3
    pdrop = 0.5  # inactive at inference (dropout == identity)

    key = jax.random.PRNGKey(0)
    kx, kw, kb = jax.random.split(key, 3)
    x = jax.random.normal(kx, (B, insz, T), dtype=jnp.float32)
    # Deterministic init mimicking nn.Conv1d default (uniform in +-1/sqrt(fan_in)).
    bound = 1.0 / (insz * filtsz) ** 0.5
    weight = jax.random.uniform(kw, (outsz, insz, filtsz), jnp.float32,
                                minval=-bound, maxval=bound)
    bias = jax.random.uniform(kb, (outsz,), jnp.float32,
                              minval=-bound, maxval=bound)

    ref = jax.block_until_ready(
        _reference_forward(x, weight, bias, filtsz=filtsz))

    # f32 compute path.
    out_f32 = jax.block_until_ready(
        conv_encoder_forward(x, weight, bias, filtsz=filtsz,
                             compute_dtype=jnp.float32))
    assert out_f32.shape == ref.shape == (B, outsz, T), out_f32.shape
    assert jnp.allclose(out_f32, ref, atol=2e-2, rtol=2e-2), (
        float(jnp.max(jnp.abs(out_f32 - ref))))

    # Default path: bf16 MXU compute with f32 accumulation -> loose tolerance.
    out_def = jax.block_until_ready(
        conv_encoder_forward(x, weight, bias, filtsz=filtsz))
    assert out_def.shape == ref.shape, out_def.shape
    assert jnp.allclose(out_def, ref, atol=6e-2, rtol=6e-2), (
        float(jnp.max(jnp.abs(out_def - ref))))

    # bf16 output + channel-last output (skips the epilogue transpose pass).
    out_bf = jax.block_until_ready(
        conv_encoder_forward(x, weight, bias, filtsz=filtsz,
                             out_dtype=jnp.bfloat16, channels_last_out=True))
    assert out_bf.shape == (B, T, outsz) and out_bf.dtype == jnp.bfloat16
    ref_tlast = jnp.transpose(ref, (0, 2, 1))
    assert jnp.allclose(out_bf.astype(jnp.float32), ref_tlast,
                        atol=6e-2, rtol=6e-2), (
        float(jnp.max(jnp.abs(out_bf.astype(jnp.float32) - ref_tlast))))

    print("KERNEL_OK")
</pallas_src>

<mosaic_0001>
module attributes {stable_mosaic.version = 11 : i64} {
  func.func @_conv1d_relu_kernel(%arg0: i32, %arg1: i32, %arg2: memref<1x18x128xf32, #tpu.memory_space<vmem>>, %arg3: memref<3x128x128xf32, #tpu.memory_space<vmem>>, %arg4: memref<1x128xf32, #tpu.memory_space<vmem>>, %arg5: memref<1x16x128xf32, #tpu.memory_space<vmem>>) attributes {dimension_semantics = [#tpu.dimension_semantics<parallel>, #tpu.dimension_semantics<arbitrary>], iteration_bounds = array<i64: 2, 1>, scalar_prefetch = 0 : i64, scratch_operands = 0 : i64, tpu.core_type = #tpu.core_type<tc>, window_params = [{transform_indices = @transform_0, window_bounds = array<i64: 1, 18, 128>}, {pipeline_mode = #tpu.pipeline_mode<synchronous>, transform_indices = @transform_1, window_bounds = array<i64: 3, 128, 128>}, {pipeline_mode = #tpu.pipeline_mode<synchronous>, transform_indices = @transform_2, window_bounds = array<i64: 1, 128>}, {transform_indices = @transform_3, window_bounds = array<i64: 1, 16, 128>}]} {
    %c16_i32 = arith.constant 16 : i32
    %0 = arith.muli %arg1, %c16_i32 : i32
    %1 = tpu.assume_multiple %0, 16 : i32
    %c0_i32 = arith.constant 0 : i32
    %2 = arith.addi %1, %c0_i32 : i32
    %c0 = arith.constant 0 : index
    %3 = arith.index_cast %2 : i32 to index
    %c0_0 = arith.constant 0 : index
    %4 = vector.load %arg2[%c0, %3, %c0_0] : memref<1x18x128xf32, #tpu.memory_space<vmem>>, vector<1x16x128xf32>
    %5 = vector.shape_cast %4 : vector<1x16x128xf32> to vector<16x128xf32>
    %c0_1 = arith.constant 0 : index
    %c0_2 = arith.constant 0 : index
    %c0_3 = arith.constant 0 : index
    %6 = vector.load %arg3[%c0_1, %c0_2, %c0_3] : memref<3x128x128xf32, #tpu.memory_space<vmem>>, vector<1x128x128xf32>
    %7 = vector.shape_cast %6 : vector<1x128x128xf32> to vector<128x128xf32>
    %cst = arith.constant dense<0.000000e+00> : vector<16x128xf32>
    %8 = tpu.matmul %5, %7, %cst {dimension_numbers = #tpu.dot_dimension_numbers<[1], [0], [0], [1], [0, 0, 1, 1], [], []>} : vector<16x128xf32>, vector<128x128xf32>, vector<16x128xf32> -> vector<16x128xf32>
    %c1_i32 = arith.constant 1 : i32
    %9 = arith.addi %1, %c1_i32 : i32
    %c0_4 = arith.constant 0 : index
    %10 = arith.index_cast %9 : i32 to index
    %c0_5 = arith.constant 0 : index
    %11 = vector.load %arg2[%c0_4, %10, %c0_5] : memref<1x18x128xf32, #tpu.memory_space<vmem>>, vector<1x16x128xf32>
    %12 = vector.shape_cast %11 : vector<1x16x128xf32> to vector<16x128xf32>
    %c1 = arith.constant 1 : index
    %c0_6 = arith.constant 0 : index
    %c0_7 = arith.constant 0 : index
    %13 = vector.load %arg3[%c1, %c0_6, %c0_7] : memref<3x128x128xf32, #tpu.memory_space<vmem>>, vector<1x128x128xf32>
    %14 = vector.shape_cast %13 : vector<1x128x128xf32> to vector<128x128xf32>
    %cst_8 = arith.constant dense<0.000000e+00> : vector<16x128xf32>
    %15 = tpu.matmul %12, %14, %cst_8 {dimension_numbers = #tpu.dot_dimension_numbers<[1], [0], [0], [1], [0, 0, 1, 1], [], []>} : vector<16x128xf32>, vector<128x128xf32>, vector<16x128xf32> -> vector<16x128xf32>
    %16 = arith.addf %8, %15 : vector<16x128xf32>
    %c2_i32 = arith.constant 2 : i32
    %17 = arith.addi %1, %c2_i32 : i32
    %c0_9 = arith.constant 0 : index
    %18 = arith.index_cast %17 : i32 to index
    %c0_10 = arith.constant 0 : index
    %19 = vector.load %arg2[%c0_9, %18, %c0_10] : memref<1x18x128xf32, #tpu.memory_space<vmem>>, vector<1x16x128xf32>
    %20 = vector.shape_cast %19 : vector<1x16x128xf32> to vector<16x128xf32>
    %c2 = arith.constant 2 : index
    %c0_11 = arith.constant 0 : index
    %c0_12 = arith.constant 0 : index
    %21 = vector.load %arg3[%c2, %c0_11, %c0_12] : memref<3x128x128xf32, #tpu.memory_space<vmem>>, vector<1x128x128xf32>
    %22 = vector.shape_cast %21 : vector<1x128x128xf32> to vector<128x128xf32>
    %cst_13 = arith.constant dense<0.000000e+00> : vector<16x128xf32>
    %23 = tpu.matmul %20, %22, %cst_13 {dimension_numbers = #tpu.dot_dimension_numbers<[1], [0], [0], [1], [0, 0, 1, 1], [], []>} : vector<16x128xf32>, vector<128x128xf32>, vector<16x128xf32> -> vector<16x128xf32>
    %24 = arith.addf %16, %23 : vector<16x128xf32>
    %c0_14 = arith.constant 0 : index
    %c0_15 = arith.constant 0 : index
    %25 = vector.load %arg4[%c0_14, %c0_15] : memref<1x128xf32, #tpu.memory_space<vmem>>, vector<1x128xf32>
    %26 = vector.broadcast %25 : vector<1x128xf32> to vector<16x128xf32>
    %27 = arith.addf %24, %26 : vector<16x128xf32>
    %cst_16 = arith.constant 0.000000e+00 : f32
    %28 = vector.broadcast %cst_16 : f32 to vector<16x128xf32>
    %29 = arith.maximumf %27, %28 : vector<16x128xf32>
    %c0_17 = arith.constant 0 : index
    %c0_18 = arith.constant 0 : index
    %c0_19 = arith.constant 0 : index
    %30 = vector.load %arg5[%c0_17, %c0_18, %c0_19] : memref<1x16x128xf32, #tpu.memory_space<vmem>>, vector<1x16x128xf32>
    %31 = vector.shape_cast %30 : vector<1x16x128xf32> to vector<16x128xf32>
    %32 = vector.shape_cast %29 : vector<16x128xf32> to vector<1x16x128xf32>
    tpu.vector_store %arg5[%c0_17, %c0_18, %c0_19], %32 {strides = array<i32>} : memref<1x16x128xf32, #tpu.memory_space<vmem>>, vector<1x16x128xf32>,
    return
  }
  func.func @transform_0(%arg0: i32, %arg1: i32) -> (i32, i32, i32) {
    %c0_i32 = arith.constant 0 : i32
    %c0_i32_0 = arith.constant 0 : i32
    %c0_i32_1 = arith.constant 0 : i32
    return %arg0, %c0_i32, %c0_i32_0 : i32, i32, i32
  }
  func.func @transform_1(%arg0: i32, %arg1: i32) -> (i32, i32, i32) {
    %c0_i32 = arith.constant 0 : i32
    %c0_i32_0 = arith.constant 0 : i32
    %c0_i32_1 = arith.constant 0 : i32
    %c0_i32_2 = arith.constant 0 : i32
    return %c0_i32, %c0_i32_0, %c0_i32_1 : i32, i32, i32
  }
  func.func @transform_2(%arg0: i32, %arg1: i32) -> (i32, i32) {
    %c0_i32 = arith.constant 0 : i32
    %c0_i32_0 = arith.constant 0 : i32
    %c0_i32_1 = arith.constant 0 : i32
    return %c0_i32, %c0_i32_0 : i32, i32
  }
  func.func @transform_3(%arg0: i32, %arg1: i32) -> (i32, i32, i32) {
    %c0_i32 = arith.constant 0 : i32
    %c0_i32_0 = arith.constant 0 : i32
    return %arg0, %arg1, %c0_i32 : i32, i32, i32
  }
}

</mosaic_0001>

<bundles_post_ra>
// kernel: tpu_custom_call.1
= control target key start
LH: loop header
LB: loop body
LE: loop exit
PB: predicated region body
PF: predicated region fallthrough
CT: control target
= control target key end

     0   :  { %8 = vsyncpa [#allocation3], 0  ;;  %s1140_s0 = inlined_call_operand.vmem [shape: f32[2,18,128], index: 0, kind: input, shape index: {}]   ;;  %s1141_s1 = inlined_call_operand.hbm [shape: f32[3,128,128], index: 1, kind: input, shape index: {}]   ;;  %s1142_s2 = inlined_call_operand.vmem [shape: f32[1,128], index: 2, kind: input, shape index: {}]   ;;  %s1143_s3 = inlined_call_operand.hbm [shape: f32[2,16,128], index: 3, kind: output, shape index: {}]  }
   0x1   :  { %9 = vsyncpa [#allocation4], 0 }
   0x2   :  { %11 = vsyncpa [#allocation4 + $0x1], 0  ;;  %s994_s12 = smov 0   ;;  %s996_s13 = smov 0  }
   0x3   :  { %s998_s14 = smov 0   ;;  %s1000_s15 = smov 0  }
   0x4   :  { %s1002_s16 = smov 0   ;;  %s1004_s17 = smov 0  }
   0x5 LB: > { %s610_s18 = sadd.s32 4294967295, %s966_s17   ;;  %s611_s19 = sadd.s32 4294967294, %s966_s17   ;;  %s966_s17 = sphi %s1004_s17, %s17_s17   ;;  %s962_s16 = sphi %s1002_s16, %s1152_s16   ;;  %s958_s15 = sphi %s1000_s15, %s1151_s15   ;;  %s954_s14 = sphi %s998_s14, %s1150_s14   ;;  %s950_s13 = sphi %s996_s13, %s1149_s13   ;;  %s946_s12 = sphi %s994_s12, %s1148_s12  }
   0x6   : > { %s29_s20 = sadd.s32 1, %s962_s16  ;;  %s106_s21 = sadd.s32 1, %s954_s14 }
   0x7   : > { %p31_p0 = scmp.ge.s32.totalorder %s29_s20, 2  ;;  %p116_p1 = scmp.ne.s32.totalorder %s954_s14, %s950_s13 }
   0x8   : > { %p117_p2 = scmp.eq.s32.totalorder %s610_s18, 1  ;;  %p122_p3 = scmp.ne.s32.totalorder %s950_s13, %s946_s12 }
   0x9   : > { %s1154_s20 = smov (%p31_p0, %s29_s20), 0  ;;  %p123_p5 = scmp.eq.s32.totalorder %s611_s19, 1 }
   0xa   : > { %p1034_p4 = por %p117_p2, %p116_p1  ;;  %s101_s23 = ssub.s32 %s962_s16, %s1154_s20 }
   0xb   : > { %p612_p6 = scmp.ge.s32.totalorder %s966_s17, 1  ;;  %p104_p7 = scmp.eq.s32.totalorder %s101_s23, 0 }
   0xc   : > { %p1041_p8 = por %p123_p5, %p122_p3  ;;  %p130_p9 = scmp.lt.s32.totalorder %s966_s17, 3 }
   0xd   : > { %s1047_s25 = scalar_select %p104_p7, %s954_s14, %s106_s21  }
   0xe   : > { %p1049_p10 = pnand %p612_p6, %p130_p9  ;;  %p1053_p11 = scmp.eq.s32.totalorder %s610_s18, 0 }
   0xf   : > { %s968_s28 = smov [#allocation2]  }
  0x10   : > { %p796_p12 = pneg %p1049_p10  ;;  %s142_s29 = sshll.u32 %s968_s28, 4  ;;  %s143_s29 = int_to_ptr.vmem [resolvable:$true] %s142_s29 }
  0x11   : > { %s871_s30 = scalar_lea.vmem %s143_s29, 6144  ;;  %p879_p5 = scmp.lt.s32.totalorder %s143_s29, %s143_s29 }
  0x12   : > { %p797_p13 = pnand %p1053_p11, %p796_p12  ;;  %p872_p1 = scmp.ne.s32.totalorder %s143_s29, %s871_s30 }
  0x13   : > { %p880_p6 = scmp.lt.s32.totalorder %s871_s30, %s871_s30 }
  0x14   : > { %p862_p0 = pneg %p797_p13 }
  0x15   : > { %p881_p7 = por %p880_p6, %p879_p5 }
  0x16   : > { %p874_p2 = pnand %p872_p1, %p862_p0 }
  0x18   : > { %p875_p3 = pneg %p874_p2 }
  0x1a   : > { %p882_p9 = pnand %p881_p7, %p875_p3 }
  0x1c   : > { %885 = shalt.err (!%p882_p9)
}
  0x1d   : > { %s969_s4 = smov 128   ;;  %s970_s5 = smov 8  }
  0x1e   : > { %799 = dma.hbm_to_vmem [thread:$0]  (!%p797_p13), %s1141_s1, 6144, %s143_s29, [#allocation3], %s969_s4, %s969_s4, %s970_s5  }
  0x1f   : > { %169 = sbr.rel (%p1049_p10) target bundleno = 319 (0x13f), region = 32 }
  0x24   : > { %937 = dma.done.wait (%p1053_p11), [#allocation3], 6144  }
  0x25   : > { %939 = vsyncadd (%p1053_p11), [#allocation3], 4294961152  ;;  %v239_v0 = vld [vmem:[#allocation2 + $0xf8] sm:$0xff]  ;;  %v238_v2 = vld [vmem:[#allocation2 + $0xf0] sm:$0xff]  ;;  %p193_p10 = scmp.lt.s32.totalorder %s958_s15, 1  ;;  %s190_s19 = sand.u32 1, %s950_s13  }
  0x26   : > { %v218_v1 = vld [vmem:[#allocation2 + $0x78] sm:$0xff]  ;;  %684 = vmatprep.subr.mxu0 %v239_v0  ;;  %v217_v3 = vld [vmem:[#allocation2 + $0x70] sm:$0xff]  ;;  %v237_v4 = vld [vmem:[#allocation2 + $0xe8] sm:$0xff]  ;;  %s617_s21 = sshll.u32 %s190_s19, 4  ;;  %s629_s29 = sshll.u32 %s958_s15, 8 }
  0x27   : > { %719 = vmatprep.subr.mxu1 %v218_v1  ;;  %685 = vmatpush3.msra.mxu0 %v239_v0  ;;  %v216_v5 = vld [vmem:[#allocation2 + $0x68] sm:$0xff]  ;;  %v236_v6 = vld [vmem:[#allocation2 + $0xe0] sm:$0xff]  ;;  %v235_v8 = vld [vmem:[#allocation2 + $0xd8] sm:$0xff]  ;;  %s194_s8 = scalar_select %p193_p10, %s958_s15, 1 }
  0x28   : > { %720 = vmatpush3.msra.mxu1 %v218_v1  ;;  %686 = vmatprep.subr.mxu0 %v238_v2  ;;  %v215_v7 = vld [vmem:[#allocation2 + $0x60] sm:$0xff]  ;;  %v214_v9 = vld [vmem:[#allocation2 + $0x58] sm:$0xff]  ;;  %v234_v10 = vld [vmem:[#allocation2 + $0xd0] sm:$0xff]  ;;  %s192_s27 = scalar_lea.vmem [#allocation5], %s617_s21  ;;  %s1093_s5 = scalar_lea.hbm %s1143_s3, %s629_s29 }
  0x29   : > { %721 = vmatprep.subr.mxu1 %v217_v3  ;;  %687 = vmatpush3.msra.mxu0 %v238_v2  ;;  %v213_v11 = vld [vmem:[#allocation2 + $0x50] sm:$0xff]  ;;  %v233_v12 = vld [vmem:[#allocation2 + $0xc8] sm:$0xff]  ;;  %v232_v14 = vld [vmem:[#allocation2 + $0xc0] sm:$0xff]  ;;  %s789_s9 = smul.u32 24, %s194_s8  ;;  %s517_s28 = sshll.u32 %s192_s27, 4  ;;  %s1088_s28 = int_to_ptr.vmem [resolvable:$true] %s517_s28 }
  0x2a   : > { %722 = vmatpush3.msra.mxu1 %v217_v3  ;;  %688 = vmatprep.subr.mxu0 %v237_v4  ;;  %v212_v13 = vld [vmem:[#allocation2 + $0x48] sm:$0xff]  ;;  %v211_v15 = vld [vmem:[#allocation2 + $0x40] sm:$0xff]  ;;  %v231_v16 = vld [vmem:[#allocation2 + $0xb8] sm:$0xff]  ;;  %s1095_s6 = scalar_lea.sflag [#allocation4], %s190_s19  ;;  %s886_s7 = scalar_lea.vmem %s1088_s28, 256 }
  0x2b   : > { %723 = vmatprep.subr.mxu1 %v216_v5  ;;  %689 = vmatpush3.msra.mxu0 %v237_v4  ;;  %v210_v17 = vld [vmem:[#allocation2 + $0x38] sm:$0xff]  ;;  %v230_v18 = vld [vmem:[#allocation2 + $0xb0] sm:$0xff]  ;;  %v229_v20 = vld [vmem:[#allocation2 + $0xa8] sm:$0xff]  ;;  %s1075_s18 = scalar_lea.vmem %s1140_s0, %s789_s9  ;;  %p887_p11 = scmp.ne.s32.totalorder %s1088_s28, %s886_s7 }
  0x2c   : > { %724 = vmatpush3.msra.mxu1 %v216_v5  ;;  %690 = vmatprep.subr.mxu0 %v236_v6  ;;  %v209_v19 = vld [vmem:[#allocation2 + $0x30] sm:$0xff]  ;;  %v208_v21 = vld [vmem:[#allocation2 + $0x28] sm:$0xff]  ;;  %v228_v22 = vld [vmem:[#allocation2 + $0xa0] sm:$0xff]  ;;  %s971_s15 = smov [#allocation5]  }
  0x2d   : > { %725 = vmatprep.subr.mxu1 %v215_v7  ;;  %691 = vmatpush3.msra.mxu0 %v236_v6  ;;  %v207_v23 = vld [vmem:[#allocation2 + $0x20] sm:$0xff]  ;;  %v227_v24 = vld [vmem:[#allocation2 + $0x98] sm:$0xff]  ;;  %v226_v26 = vld [vmem:[#allocation2 + $0x90] sm:$0xff]  ;;  %p888_p12 = pnand %p887_p11, %p1034_p4  ;;  %s890_s8 = sshll.u32 %s971_s15, 4  ;;  %s891_s8 = int_to_ptr.vmem [resolvable:$false] %s890_s8 }
  0x2e   : > { %726 = vmatpush3.msra.mxu1 %v215_v7  ;;  %692 = vmatprep.subr.mxu0 %v235_v8  ;;  %v206_v25 = vld [vmem:[#allocation2 + $0x18] sm:$0xff]  ;;  %v205_v27 = vld [vmem:[#allocation2 + $0x10] sm:$0xff]  ;;  %v225_v28 = vld [vmem:[#allocation2 + $0x88] sm:$0xff]  ;;  %s892_s9 = scalar_lea.vmem %s891_s8, 512  ;;  %p893_p0 = scmp.lt.s32.totalorder %s1088_s28, %s891_s8 }
  0x2f   : > { %727 = vmatprep.subr.mxu1 %v214_v9  ;;  %693 = vmatpush3.msra.mxu0 %v235_v8  ;;  %v204_v29 = vld [vmem:[#allocation2 + $0x8] sm:$0xff]  ;;  %v224_v30 = vld [vmem:[#allocation2 + $0x80] sm:$0xff]  ;;  %v410_v36 = vld [vmem:[#allocation2 + $0x178] sm:$0xff]  ;;  %p889_p13 = pneg %p888_p12  ;;  %p894_p1 = scmp.lt.s32.totalorder %s892_s9, %s886_s7 }
  0x30   : > { %728 = vmatpush3.msra.mxu1 %v214_v9  ;;  %694 = vmatprep.subr.mxu0 %v234_v10  ;;  %v203_v31 = vld [vmem:[#allocation2] sm:$0xff]  ;;  %v620_v34 = vld [vmem:[%s1075_s18 + $0x9] sm:$0xff]  ;;  %v406_v41 = vld [vmem:[#allocation2 + $0x158] sm:$0xff] }
  0x31   : > { %729 = vmatprep.subr.mxu1 %v213_v11  ;;  %695 = vmatpush3.msra.mxu0 %v234_v10  ;;  %v619_v32 = vld [vmem:[%s1075_s18 + $0x1] sm:$0xff]  ;;  %v409_v38 = vld [vmem:[#allocation2 + $0x170] sm:$0xff]  ;;  %v402_v45 = vld [vmem:[#allocation2 + $0x138] sm:$0xff]  ;;  %p895_p2 = por %p894_p1, %p893_p0 }
  0x32   : > { %730 = vmatpush3.msra.mxu1 %v213_v11  ;;  %696 = vmatprep.subr.mxu0 %v233_v12  ;;  %v201_v33 = vld [vmem:[%s1075_s18] sm:$0xff]  ;;  %v202_v35 = vld [vmem:[%s1075_s18 + $0x8] sm:$0xff]  ;;  %v405_v42 = vld [vmem:[#allocation2 + $0x150] sm:$0xff] }
  0x33   : > { %731 = vmatprep.subr.mxu1 %v212_v13  ;;  %697 = vmatpush3.msra.mxu0 %v233_v12  ;;  %v621_v37 = vld [vmem:[%s1075_s18 + $0x2] sm:$0xff]  ;;  %v401_v46 = vld [vmem:[#allocation2 + $0x130] sm:$0xff]  ;;  %v398_v49 = vld [vmem:[#allocation2 + $0x118] sm:$0xff]  ;;  %p896_p3 = pnand %p895_p2, %p889_p13 }
  0x34   : > { %732 = vmatpush3.msra.mxu1 %v212_v13  ;;  %698 = vmatprep.subr.mxu0 %v232_v14  ;;  %v408_v39 = vld [vmem:[#allocation2 + $0x168] sm:$0xff]  ;;  %v407_v40 = vld [vmem:[#allocation2 + $0x160] sm:$0xff]  ;;  %v397_v50 = vld [vmem:[#allocation2 + $0x110] sm:$0xff] }
  0x35   : > { %733 = vmatprep.subr.mxu1 %v211_v15  ;;  %699 = vmatpush3.msra.mxu0 %v232_v14  ;;  %v404_v43 = vld [vmem:[#allocation2 + $0x148] sm:$0xff]  ;;  %v403_v44 = vld [vmem:[#allocation2 + $0x140] sm:$0xff] }
  0x36   : > { %734 = vmatpush3.msra.mxu1 %v211_v15  ;;  %700 = vmatprep.subr.mxu0 %v231_v16  ;;  %v400_v47 = vld [vmem:[#allocation2 + $0x128] sm:$0xff]  ;;  %v399_v48 = vld [vmem:[#allocation2 + $0x120] sm:$0xff] }
  0x37   : > { %735 = vmatprep.subr.mxu1 %v210_v17  ;;  %701 = vmatpush3.msra.mxu0 %v231_v16  ;;  %v396_v51 = vld [vmem:[#allocation2 + $0x108] sm:$0xff]  ;;  %v395_v52 = vld [vmem:[#allocation2 + $0x100] sm:$0xff] }
  0x38   : > { %736 = vmatpush3.msra.mxu1 %v210_v17  ;;  %702 = vmatprep.subr.mxu0 %v230_v18  ;;  %v622_v53 = vld [vmem:[%s1075_s18 + $0xa] sm:$0xff]  ;;  %v623_v60 = vld [vmem:[%s1142_s2] ss:$0 sm:$0xff] }
  0x39   : > { %737 = vmatprep.subr.mxu1 %v209_v19  ;;  %703 = vmatpush3.msra.mxu0 %v230_v18 }
  0x3a   : > { %738 = vmatpush3.msra.mxu1 %v209_v19  ;;  %704 = vmatprep.subr.mxu0 %v229_v20 }
  0x3b   : > { %739 = vmatprep.subr.mxu1 %v208_v21  ;;  %705 = vmatpush3.msra.mxu0 %v229_v20 }
  0x3c   : > { %740 = vmatpush3.msra.mxu1 %v208_v21  ;;  %706 = vmatprep.subr.mxu0 %v228_v22 }
  0x3d   : > { %741 = vmatprep.subr.mxu1 %v207_v23  ;;  %707 = vmatpush3.msra.mxu0 %v228_v22 }
  0x3e   : > { %742 = vmatpush3.msra.mxu1 %v207_v23  ;;  %708 = vmatprep.subr.mxu0 %v227_v24 }
  0x3f   : > { %743 = vmatprep.subr.mxu1 %v206_v25  ;;  %709 = vmatpush3.msra.mxu0 %v227_v24 }
  0x40   : > { %744 = vmatpush3.msra.mxu1 %v206_v25  ;;  %710 = vmatprep.subr.mxu0 %v226_v26 }
  0x41   : > { %745 = vmatprep.subr.mxu1 %v205_v27  ;;  %711 = vmatpush3.msra.mxu0 %v226_v26 }
  0x42   : > { %746 = vmatpush3.msra.mxu1 %v205_v27  ;;  %712 = vmatprep.subr.mxu0 %v225_v28 }
  0x43   : > { %747 = vmatprep.subr.mxu1 %v204_v29  ;;  %713 = vmatpush3.msra.mxu0 %v225_v28 }
  0x44   : > { %748 = vmatpush3.msra.mxu1 %v204_v29  ;;  %714 = vmatprep.subr.mxu0 %v224_v30 }
  0x45   : > { %749 = vmatprep.subr.mxu1 %v203_v31  ;;  %715 = vmatpush3.msra.mxu0 %v224_v30 }
  0x46   : > { %716 = vmatprep.mubr.f32.mxu0 %v619_v32  ;;  %750 = vmatpush3.msra.mxu1 %v203_v31 }
  0x47   : > { %751 = vmatprep.mubr.f32.mxu1 %v201_v33  ;;  %717 = vmatmul.mubr.f32.vlgmr.msra.gmra.mxu0 %v620_v34 }
  0x48   : > { %752 = vmatmul.mubr.f32.vlgmr.msra.gmra.mxu1 %v202_v35  ;;  %754 = vmatprep.subr.mxu0 %v410_v36 }
  0x49   : > { %786 = vmatprep.mubr.f32.mxu0 %v621_v37  ;;  %755 = vmatpush3.msra.mxu0 %v410_v36 }
  0x4a   : > { %756 = vmatprep.subr.mxu0 %v409_v38 }
  0x4b   : > { %757 = vmatpush3.msra.mxu0 %v409_v38 }
  0x4c   : > { %758 = vmatprep.subr.mxu0 %v408_v39 }
  0x4d   : > { %759 = vmatpush3.msra.mxu0 %v408_v39 }
  0x4e   : > { %760 = vmatprep.subr.mxu0 %v407_v40 }
  0x4f   : > { %761 = vmatpush3.msra.mxu0 %v407_v40 }
  0x50   : > { %762 = vmatprep.subr.mxu0 %v406_v41 }
  0x51   : > { %763 = vmatpush3.msra.mxu0 %v406_v41 }
  0x52   : > { %764 = vmatprep.subr.mxu0 %v405_v42 }
  0x53   : > { %765 = vmatpush3.msra.mxu0 %v405_v42 }
  0x54   : > { %766 = vmatprep.subr.mxu0 %v404_v43 }
  0x55   : > { %767 = vmatpush3.msra.mxu0 %v404_v43 }
  0x56   : > { %768 = vmatprep.subr.mxu0 %v403_v44 }
  0x57   : > { %769 = vmatpush3.msra.mxu0 %v403_v44 }
  0x58   : > { %770 = vmatprep.subr.mxu0 %v402_v45 }
  0x59   : > { %771 = vmatpush3.msra.mxu0 %v402_v45 }
  0x5a   : > { %772 = vmatprep.subr.mxu0 %v401_v46 }
  0x5b   : > { %773 = vmatpush3.msra.mxu0 %v401_v46 }
  0x5c   : > { %774 = vmatprep.subr.mxu0 %v400_v47 }
  0x5d   : > { %775 = vmatpush3.msra.mxu0 %v400_v47 }
  0x5e   : > { %776 = vmatprep.subr.mxu0 %v399_v48 }
  0x5f   : > { %777 = vmatpush3.msra.mxu0 %v399_v48 }
  0x60   : > { %778 = vmatprep.subr.mxu0 %v398_v49 }
  0x61   : > { %779 = vmatpush3.msra.mxu0 %v398_v49 }
  0x62   : > { %780 = vmatprep.subr.mxu0 %v397_v50 }
  0x63   : > { %781 = vmatpush3.msra.mxu0 %v397_v50 }
  0x64   : > { %782 = vmatprep.subr.mxu0 %v396_v51 }
  0x65   : > { %783 = vmatpush3.msra.mxu0 %v396_v51 }
  0x66   : > { %784 = vmatprep.subr.mxu0 %v395_v52 }
  0x67   : > { %785 = vmatpush3.msra.mxu0 %v395_v52 }
  0x68   : > { %787 = vmatmul.mubr.f32.vlgmr.msra.gmra.mxu0 %v622_v53 }
 0x107   : > { %v718_v54 = vpop.f32.mrf.mxu0 }
 0x108   : > { %v753_v55 = vpop.f32.mrf.mxu1 }
 0x109   : > { %v306_v56 = vpop.f32.mrf.mxu0  ;;  %v387_v58 = vadd.f32 %v753_v55, %v718_v54 }
 0x10a   : > { %v381_v57 = vpop.f32.mrf.mxu1 }
 0x10b   : > { %v382_v61 = vadd.f32 %v381_v57, %v306_v56 }
 0x128   : > { %v788_v59 = vpop.f32.mrf.mxu0 }
 0x129   : > { %v487_v62 = vadd.f32 %v788_v59, %v387_v58 }
 0x12a   : > { %v477_v63 = vpop.f32.mrf.mxu0 }
 0x12b   : > { %v496_v0 = vadd.f32 %v623_v60, %v487_v62  ;;  %v486_v1 = vadd.f32 %v477_v63, %v382_v61 }
 0x12d   : > { %v498_v2 = vmax.f32 %v496_v0, 0.0  ;;  %v495_v3 = vadd.f32 %v623_v60, %v486_v1 }
 0x12f   : > { %500 = vst [vmem:[%s192_s27 + $0x8] sm:$0xff] %v498_v2  ;;  %v497_v4 = vmax.f32 %v495_v3, 0.0 }
 0x131   : > { %499 = vst [vmem:[%s192_s27] sm:$0xff] %v497_v4 }
 0x132   : > { %899 = shalt.err (!%p896_p3)
}
 0x133   : > { %s900_s10 = scalar_lea.hbm %s1093_s5, 256  ;;  %s904_s19 = scalar_lea.hbm %s1143_s3, 512 }
 0x134   : > { %p901_p5 = scmp.ne.s32.totalorder %s1093_s5, %s900_s10  ;;  %p905_p9 = scmp.lt.s32.totalorder %s1093_s5, %s1143_s3 }
 0x135   : > { %p906_p10 = scmp.lt.s32.totalorder %s904_s19, %s900_s10 }
 0x136   : > { %p902_p6 = pnand %p901_p5, %p1034_p4 }
 0x137   : > { %p907_p11 = por %p906_p10, %p905_p9 }
 0x138   : > { %p903_p7 = pneg %p902_p6 }
 0x13a   : > { %p908_p12 = pnand %p907_p11, %p903_p7 }
 0x13c   : > { %911 = shalt.err (!%p908_p12)
}
 0x13d   : > { %s972_s26 = smov 128   ;;  %s973_s27 = smov 8  }
 0x13e   : > { %794 = dma.vmem_to_hbm [thread:$0]  (%p1034_p4), %s1088_s28, 256, %s1093_s5, %s1095_s6, %s972_s26, %s972_s26, %s973_s27  }
 0x13f PF: > { %p806_p13 = scmp.ge.s32.totalorder %s966_s17, 2  ;;  %s532_s29 = sand.u32 1, %s946_s12  }
 0x140   : > { %s533_s30 = scalar_lea.sflag [#allocation4], %s532_s29 }
 0x141   : > { %p801_p0 = pnand %p806_p13, %p1041_p8 }
 0x143   : > { %p802_p1 = pneg %p801_p0 }
 0x145   : > { %941 = dma.done.wait (%p802_p1), %s533_s30, 256  }
 0x146   : > { %943 = vsyncadd (%p802_p1), %s533_s30, 4294967040  ;;  %s17_s17 = sadd.s32 1, %s966_s17   ;;  %s1148_s12 = smov %s950_s13 }
 0x147   : > { %p14_p2 = scmp.ge.s32.totalorder %s17_s17, 4   ;;  %s1149_s13 = smov %s954_s14 }
 0x148   : > { %s1150_s14 = smov %s1047_s25  ;;  %s1151_s15 = smov %s962_s16 }
 0x149   : > { %s1152_s16 = smov %s1154_s20  ;;  %16 = sbr.rel (!%p14_p2) target bundleno = 5 (0x5), region = 77 }
 0x14e   :  { %538 = vsyncpa [#allocation3], 1 }
 0x14f   :  { %540 = vsyncpa [#allocation3 + $0x1], 1 }
 0x150   :  { %541 = vsyncpa [#allocation4], 1 }
 0x151   :  { %543 = vsyncpa [#allocation4 + $0x1], 1 }

</bundles_post_ra>
